<compile_context>
chip_gen: v7x
topology: tpu7x:2x2x1
jax: 0.10.0
libtpu: 0.0.40
codegen_flags: <defaults>
</compile_context>

<pallas_src>
import functools

import jax
import jax.numpy as jnp
from jax.experimental import pallas as pl
from jax.experimental.pallas import tpu as pltpu

DELTA = 5.0
SCALE = 112.5
LANES = 128


def _huber_kernel(p_ref, t_ref, o_ref, *, row_tile, steps_per_core, n_rows_valid):
    """Accumulate per-block Huber sums into an (8,128) per-core partial output."""
    c = pl.program_id(0)   # core split (parallel)
    i = pl.program_id(1)   # reduction steps (arbitrary)

    @pl.when(i == 0)
    def _():
        o_ref[...] = jnp.zeros_like(o_ref)

    d = p_ref[...].astype(jnp.float32) - t_ref[...].astype(jnp.float32)
    ad = jnp.abs(d)
    per = jnp.where(ad <= DELTA, 0.5 * d * d, DELTA * (ad - 0.5 * DELTA))

    # Unclamped global row base of this (c, i) block.  Out-of-range blocks
    # (from the 2-way core split) and the ragged last block both fail `full`.
    base_row = (c * steps_per_core + i) * row_tile
    full = base_row + row_tile <= n_rows_valid

    @pl.when(full)
    def _():
        # Steady-state path: (row_tile,128) -> (row_tile//8, 8, 128); axis-0 sum
        # is vreg-wise VPU adds, no cross-lane work, no masking.
        o_ref[...] += per.reshape(row_tile // 8, 8, LANES).sum(axis=0)

    @pl.when(jnp.logical_not(full))
    def _():
        # Ragged / out-of-range block: mask rows beyond the valid range.
        # (row_tile,1) column iota — mask is constant across lanes.
        row_idx = jax.lax.broadcasted_iota(jnp.int32, (row_tile, 1), 0)
        masked = jnp.where(base_row + row_idx < n_rows_valid, per, 0.0)
        o_ref[...] += masked.reshape(row_tile // 8, 8, LANES).sum(axis=0)


def _huber_sum(p, t):
    d = p.astype(jnp.float32) - t.astype(jnp.float32)
    ad = jnp.abs(d)
    return jnp.sum(jnp.where(ad <= DELTA, 0.5 * d * d, DELTA * (ad - 0.5 * DELTA)))


def huber_loss(emb, preds, targets, *, row_tile=4096):
    """HuberLoss(delta=5, reduction='mean')(preds, targets) / 112.5 (scalar f32)."""
    del emb  # unused, signature parity with the PyTorch module
    assert preds.shape == targets.shape
    n_elems = preds.size
    itemsize = jnp.dtype(preds.dtype).itemsize
    sublane = {4: 8, 2: 16, 1: 32}.get(itemsize, 8)   # native sublane tile
    align = sublane * LANES

    flat_p = preds.reshape(-1)
    flat_t = targets.reshape(-1)

    inv = 1.0 / (float(n_elems) * SCALE)
    split = (n_elems // align) * align

    # Tail (< align elements): plain JAX, avoids any full-array pad/copy.
    tail_sum = jnp.float32(0.0)
    if split < n_elems:
        tail_sum = _huber_sum(flat_p[split:], flat_t[split:])

    if split == 0:
        # Input smaller than one native tile — nothing for the kernel to do.
        return tail_sum * inv

    rows = split // LANES                       # multiple of `sublane`
    p2 = flat_p[:split].reshape(rows, LANES)    # contiguous prefix slice (no copy)
    t2 = flat_t[:split].reshape(rows, LANES)

    # Dtype-aware tile clamp (multiple of the sublane tile, <= rows).
    row_tile = max(sublane, min(int(row_tile), rows))
    row_tile = (row_tile // sublane) * sublane

    steps = pl.cdiv(rows, row_tile)
    steps_per_core = pl.cdiv(steps, 2)          # 2-way split for v7x megacore

    def in_map(c, i):
        # Clamp so DMAs never go past the array; out-of-range blocks are
        # fully masked inside the kernel (contribute 0).
        return (jnp.minimum(c * steps_per_core + i, steps - 1), 0)

    # Double-buffered input bytes; only raise the scoped-VMEM limit if needed
    # (default 4096-row tile -> 8 MiB, within every generation's default).
    dbuf_bytes = 2 * 2 * row_tile * LANES * itemsize
    vmem_limit = None
    if dbuf_bytes > 12 * 1024 * 1024:
        vmem_limit = min(dbuf_bytes + (4 << 20), 48 << 20)

    partials = pl.pallas_call(
        functools.partial(
            _huber_kernel,
            row_tile=row_tile,
            steps_per_core=steps_per_core,
            n_rows_valid=rows,
        ),
        out_shape=jax.ShapeDtypeStruct((2, 8, LANES), jnp.float32),
        grid_spec=pltpu.PrefetchScalarGridSpec(
            num_scalar_prefetch=0,
            grid=(2, steps_per_core),
            in_specs=[
                pl.BlockSpec((row_tile, LANES), in_map),
                pl.BlockSpec((row_tile, LANES), in_map),
            ],
            # One (8,128) partial-sum block per core, resident across the
            # reduction axis.
            out_specs=pl.BlockSpec((None, 8, LANES), lambda c, i: (c, 0, 0)),
        ),
        compiler_params=pltpu.CompilerParams(
            dimension_semantics=("parallel", "arbitrary"),
            vmem_limit_bytes=vmem_limit,
        ),
        cost_estimate=pl.CostEstimate(
            flops=8 * split,
            transcendentals=0,
            bytes_accessed=2 * split * itemsize + 2 * 8 * LANES * 4,
        ),
    )(p2, t2)

    # Final tiny reduce (2*8*128 values) + tail + 1/(N*112.5) scale in JAX.
    return (jnp.sum(partials) + tail_sum) * inv

    # TODO(synk): for N >~ 1e8 a pairwise/chunked final reduce would recover a
    # few ULPs vs the per-lane linear accumulation; irrelevant for a loss.


def _huber_ref(preds, targets):
    d = preds.astype(jnp.float32) - targets.astype(jnp.float32)
    ad = jnp.abs(d)
    per = jnp.where(ad <= DELTA, 0.5 * d * d, DELTA * (ad - 0.5 * DELTA))
    return jnp.mean(per) / SCALE


if __name__ == "__main__":
    key = jax.random.PRNGKey(0)
    ks = jax.random.split(key, 8)

    # Primary check: shapes consistent with the module's forward.
    batch, n_out, hidden = 16, 128, 32
    emb = jax.random.normal(ks[0], (batch, hidden), dtype=jnp.float32)  # unused
    preds = 10.0 * jax.random.normal(ks[1], (batch, n_out), dtype=jnp.float32)
    targets = 10.0 * jax.random.normal(ks[2], (batch, n_out), dtype=jnp.float32)
    loss = jax.block_until_ready(huber_loss(emb, preds, targets))
    ref = _huber_ref(preds, targets)
    assert jnp.allclose(loss, ref, rtol=1e-5, atol=1e-6), (loss, ref)

    # Ragged grid: partial last block + out-of-range block on the second core.
    p2 = 10.0 * jax.random.normal(ks[3], (3, 8, 128), dtype=jnp.float32)
    t2 = 10.0 * jax.random.normal(ks[4], (3, 8, 128), dtype=jnp.float32)
    l2 = jax.block_until_ready(huber_loss(None, p2, t2, row_tile=16))
    r2 = _huber_ref(p2, t2)
    assert jnp.allclose(l2, r2, rtol=1e-5, atol=1e-6), (l2, r2)

    # Unaligned size: aligned prefix through the kernel + JAX tail (no pad copy).
    p3 = 10.0 * jax.random.normal(ks[5], (7, 200), dtype=jnp.float32)
    t3 = 10.0 * jax.random.normal(ks[6], (7, 200), dtype=jnp.float32)
    l3 = jax.block_until_ready(huber_loss(None, p3, t3))
    r3 = _huber_ref(p3, t3)
    assert jnp.allclose(l3, r3, rtol=1e-5, atol=1e-6), (l3, r3)

    # Tiny input: entirely handled by the JAX tail path.
    p4 = 10.0 * jax.random.normal(ks[7], (5, 100), dtype=jnp.float32)
    t4 = -p4
    l4 = jax.block_until_ready(huber_loss(None, p4, t4))
    r4 = _huber_ref(p4, t4)
    assert jnp.allclose(l4, r4, rtol=1e-5, atol=1e-6), (l4, r4)

    # bf16 inputs: dtype-aware (16-row) sublane tiling.
    p5 = (10.0 * jax.random.normal(ks[1], (32, 256), jnp.float32)).astype(jnp.bfloat16)
    t5 = (10.0 * jax.random.normal(ks[2], (32, 256), jnp.float32)).astype(jnp.bfloat16)
    l5 = jax.block_until_ready(huber_loss(None, p5, t5))
    r5 = _huber_ref(p5, t5)
    assert jnp.allclose(l5, r5, rtol=1e-4, atol=1e-5), (l5, r5)

    print("KERNEL_OK")
</pallas_src>

<mosaic_0001>
module attributes {stable_mosaic.version = 11 : i64} {
  func.func @_huber_kernel(%arg0: i32, %arg1: i32, %arg2: memref<16x128xf32, #tpu.memory_space<vmem>>, %arg3: memref<16x128xf32, #tpu.memory_space<vmem>>, %arg4: memref<1x8x128xf32, #tpu.memory_space<vmem>>) attributes {dimension_semantics = [#tpu.dimension_semantics<parallel>, #tpu.dimension_semantics<arbitrary>], iteration_bounds = array<i64: 2, 1>, scalar_prefetch = 0 : i64, scratch_operands = 0 : i64, tpu.core_type = #tpu.core_type<tc>, window_params = [{transform_indices = @transform_0, window_bounds = array<i64: 16, 128>}, {transform_indices = @transform_1, window_bounds = array<i64: 16, 128>}, {transform_indices = @transform_2, window_bounds = array<i64: 1, 8, 128>}]} {
    %c0_i32 = arith.constant 0 : i32
    %0 = arith.cmpi eq, %arg1, %c0_i32 : i32
    %1 = arith.extui %0 : i1 to i32
    %c0_i32_0 = arith.constant 0 : i32
    %2 = arith.cmpi ne, %1, %c0_i32_0 : i32
    scf.if %2 {
      %cst_11 = arith.constant 0.000000e+00 : f32
      %27 = vector.broadcast %cst_11 : f32 to vector<8x128xf32>
      %c0_12 = arith.constant 0 : index
      %c0_13 = arith.constant 0 : index
      %c0_14 = arith.constant 0 : index
      %28 = vector.load %arg4[%c0_12, %c0_13, %c0_14] : memref<1x8x128xf32, #tpu.memory_space<vmem>>, vector<1x8x128xf32>
      %29 = vector.shape_cast %28 : vector<1x8x128xf32> to vector<8x128xf32>
      %30 = vector.shape_cast %27 : vector<8x128xf32> to vector<1x8x128xf32>
      tpu.vector_store %arg4[%c0_12, %c0_13, %c0_14], %30 {strides = array<i32>} : memref<1x8x128xf32, #tpu.memory_space<vmem>>, vector<1x8x128xf32>,
    } else {
    }
    %c0 = arith.constant 0 : index
    %c0_1 = arith.constant 0 : index
    %3 = vector.load %arg2[%c0, %c0_1] : memref<16x128xf32, #tpu.memory_space<vmem>>, vector<16x128xf32>
    %c0_2 = arith.constant 0 : index
    %c0_3 = arith.constant 0 : index
    %4 = vector.load %arg3[%c0_2, %c0_3] : memref<16x128xf32, #tpu.memory_space<vmem>>, vector<16x128xf32>
    %5 = arith.subf %3, %4 : vector<16x128xf32>
    %6 = math.absf %5 : vector<16x128xf32>
    %cst = arith.constant 5.000000e+00 : f32
    %7 = vector.broadcast %cst : f32 to vector<16x128xf32>
    %8 = arith.cmpf ole, %6, %7 : vector<16x128xf32>
    %cst_4 = arith.constant 5.000000e-01 : f32
    %9 = vector.broadcast %cst_4 : f32 to vector<16x128xf32>
    %10 = arith.mulf %9, %5 : vector<16x128xf32>
    %11 = arith.mulf %10, %5 : vector<16x128xf32>
    %cst_5 = arith.constant 2.500000e+00 : f32
    %12 = vector.broadcast %cst_5 : f32 to vector<16x128xf32>
    %13 = arith.subf %6, %12 : vector<16x128xf32>
    %cst_6 = arith.constant 5.000000e+00 : f32
    %14 = vector.broadcast %cst_6 : f32 to vector<16x128xf32>
    %15 = arith.mulf %14, %13 : vector<16x128xf32>
    %16 = arith.select %8, %11, %15 : vector<16x128xi1>, vector<16x128xf32>
    %c1_i32 = arith.constant 1 : i32
    %17 = arith.muli %arg0, %c1_i32 : i32
    %18 = arith.addi %17, %arg1 : i32
    %c16_i32 = arith.constant 16 : i32
    %19 = arith.muli %18, %c16_i32 : i32
    %c16_i32_7 = arith.constant 16 : i32
    %20 = arith.addi %19, %c16_i32_7 : i32
    %c16_i32_8 = arith.constant 16 : i32
    %21 = arith.cmpi sle, %20, %c16_i32_8 : i32
    %22 = arith.extui %21 : i1 to i32
    %c0_i32_9 = arith.constant 0 : i32
    %23 = arith.cmpi ne, %22, %c0_i32_9 : i32
    scf.if %23 {
      %c0_11 = arith.constant 0 : index
      %c0_12 = arith.constant 0 : index
      %c0_13 = arith.constant 0 : index
      %27 = vector.load %arg4[%c0_11, %c0_12, %c0_13] : memref<1x8x128xf32, #tpu.memory_space<vmem>>, vector<1x8x128xf32>
      %28 = vector.shape_cast %27 : vector<1x8x128xf32> to vector<8x128xf32>
      %29 = vector.shape_cast %16 : vector<16x128xf32> to vector<2x8x128xf32>
      %cst_14 = arith.constant dense<0.000000e+00> : vector<8x128xf32>
      %30 = vector.multi_reduction <add>, %29, %cst_14 [0] : vector<2x8x128xf32> to vector<8x128xf32>
      %31 = arith.addf %28, %30 : vector<8x128xf32>
      %c0_15 = arith.constant 0 : index
      %c0_16 = arith.constant 0 : index
      %c0_17 = arith.constant 0 : index
      %32 = vector.load %arg4[%c0_15, %c0_16, %c0_17] : memref<1x8x128xf32, #tpu.memory_space<vmem>>, vector<1x8x128xf32>
      %33 = vector.shape_cast %32 : vector<1x8x128xf32> to vector<8x128xf32>
      %34 = vector.shape_cast %31 : vector<8x128xf32> to vector<1x8x128xf32>
      tpu.vector_store %arg4[%c0_15, %c0_16, %c0_17], %34 {strides = array<i32>} : memref<1x8x128xf32, #tpu.memory_space<vmem>>, vector<1x8x128xf32>,
    } else {
    }
    %true = arith.constant true
    %24 = arith.xori %21, %true : i1
    %25 = arith.extui %24 : i1 to i32
    %c0_i32_10 = arith.constant 0 : i32
    %26 = arith.cmpi ne, %25, %c0_i32_10 : i32
    scf.if %26 {
      %27 = tpu.iota {dimensions = array<i32: 0>} : vector<16x1xi32>
      %28 = vector.broadcast %19 : i32 to vector<16x1xi32>
      %29 = arith.addi %28, %27 : vector<16x1xi32>
      %c16_i32_11 = arith.constant 16 : i32
      %30 = vector.broadcast %c16_i32_11 : i32 to vector<16x1xi32>
      %31 = arith.cmpi slt, %29, %30 : vector<16x1xi32>
      %cst_12 = arith.constant 0.000000e+00 : f32
      %32 = vector.shape_cast %31 : vector<16x1xi1> to vector<16x1xi1>
      %33 = vector.broadcast %32 : vector<16x1xi1> to vector<16x128xi1>
      %34 = vector.broadcast %cst_12 : f32 to vector<16x128xf32>
      %35 = arith.select %33, %16, %34 : vector<16x128xi1>, vector<16x128xf32>
      %c0_13 = arith.constant 0 : index
      %c0_14 = arith.constant 0 : index
      %c0_15 = arith.constant 0 : index
      %36 = vector.load %arg4[%c0_13, %c0_14, %c0_15] : memref<1x8x128xf32, #tpu.memory_space<vmem>>, vector<1x8x128xf32>
      %37 = vector.shape_cast %36 : vector<1x8x128xf32> to vector<8x128xf32>
      %38 = vector.shape_cast %35 : vector<16x128xf32> to vector<2x8x128xf32>
      %cst_16 = arith.constant dense<0.000000e+00> : vector<8x128xf32>
      %39 = vector.multi_reduction <add>, %38, %cst_16 [0] : vector<2x8x128xf32> to vector<8x128xf32>
      %40 = arith.addf %37, %39 : vector<8x128xf32>
      %c0_17 = arith.constant 0 : index
      %c0_18 = arith.constant 0 : index
      %c0_19 = arith.constant 0 : index
      %41 = vector.load %arg4[%c0_17, %c0_18, %c0_19] : memref<1x8x128xf32, #tpu.memory_space<vmem>>, vector<1x8x128xf32>
      %42 = vector.shape_cast %41 : vector<1x8x128xf32> to vector<8x128xf32>
      %43 = vector.shape_cast %40 : vector<8x128xf32> to vector<1x8x128xf32>
      tpu.vector_store %arg4[%c0_17, %c0_18, %c0_19], %43 {strides = array<i32>} : memref<1x8x128xf32, #tpu.memory_space<vmem>>, vector<1x8x128xf32>,
    } else {
    }
    return
  }
  func.func @transform_0(%arg0: i32, %arg1: i32) -> (i32, i32) {
    %c1_i32 = arith.constant 1 : i32
    %0 = arith.muli %arg0, %c1_i32 : i32
    %1 = arith.addi %0, %arg1 : i32
    %c0_i32 = arith.constant 0 : i32
    %2 = arith.minsi %1, %c0_i32 : i32
    %c0_i32_0 = arith.constant 0 : i32
    %c0_i32_1 = arith.constant 0 : i32
    return %2, %c0_i32_0 : i32, i32
  }
  func.func @transform_1(%arg0: i32, %arg1: i32) -> (i32, i32) {
    %c1_i32 = arith.constant 1 : i32
    %0 = arith.muli %arg0, %c1_i32 : i32
    %1 = arith.addi %0, %arg1 : i32
    %c0_i32 = arith.constant 0 : i32
    %2 = arith.minsi %1, %c0_i32 : i32
    %c0_i32_0 = arith.constant 0 : i32
    %c0_i32_1 = arith.constant 0 : i32
    return %2, %c0_i32_0 : i32, i32
  }
  func.func @transform_2(%arg0: i32, %arg1: i32) -> (i32, i32, i32) {
    %c0_i32 = arith.constant 0 : i32
    %c0_i32_0 = arith.constant 0 : i32
    %c0_i32_1 = arith.constant 0 : i32
    return %arg0, %c0_i32, %c0_i32_0 : i32, i32, i32
  }
}

</mosaic_0001>

<bundles_post_ra>
// kernel: tpu_custom_call.1
= control target key start
LH: loop header
LB: loop body
LE: loop exit
PB: predicated region body
PF: predicated region fallthrough
CT: control target
= control target key end

     0   :  { %7 = vsyncpa [#allocation3], 0  ;;  %s940_s0 = inlined_call_operand.hbm [shape: f32[16,128], index: 0, kind: input, shape index: {}]   ;;  %s941_s1 = inlined_call_operand.hbm [shape: f32[16,128], index: 1, kind: input, shape index: {}]   ;;  %s942_s2 = inlined_call_operand.hbm [shape: f32[2,8,128], index: 2, kind: output, shape index: {}]  }
   0x1   :  { %9 = vsyncpa [#allocation3 + $0x1], 0 }
   0x2   :  { %10 = vsyncpa [#allocation6], 0 }
   0x3   :  { %12 = vsyncpa [#allocation6 + $0x1], 0 }
   0x4   :  { %13 = vsyncpa [#allocation4], 0 }
   0x5   :  { %15 = vsyncpa [#allocation4 + $0x1], 0  ;;  %s722_s9 = smov 0   ;;  %s724_s10 = smov 0  }
   0x6   :  { %s726_s11 = smov 0   ;;  %s728_s12 = smov 0  }
   0x7   :  { %s730_s13 = smov 0   ;;  %s732_s14 = smov 0  }
   0x8   :  { %s734_s15 = smov 0   ;;  %s736_s16 = smov 0  }
   0x9 LB: > { %s413_s17 = sadd.s32 4294967295, %s699_s16   ;;  %s414_s18 = sadd.s32 4294967294, %s699_s16   ;;  %s699_s16 = sphi %s736_s16, %s21_s16   ;;  %s695_s15 = sphi %s734_s15, %s961_s15   ;;  %s691_s14 = sphi %s732_s14, %s960_s14   ;;  %s687_s13 = sphi %s730_s13, %s930_s13   ;;  %s683_s12 = sphi %s728_s12, %s959_s12   ;;  %s679_s11 = sphi %s726_s11, %s958_s11   ;;  %s675_s10 = sphi %s724_s10, %s957_s10   ;;  %s671_s9 = sphi %s722_s9, %s956_s9  }
   0xa   : > { %s33_s19 = sadd.s32 1, %s695_s15  ;;  %p668_p1 = scmp.ne.s32.totalorder %s687_s13, 0 }
   0xb   : > { %p35_p0 = scmp.ge.s32.totalorder %s33_s19, 2  ;;  %p54_p2 = scmp.eq.s32.totalorder %s699_s16, 0 }
   0xc   : > { %p59_p3 = scmp.ne.s32.totalorder %s687_s13, %s683_s12  ;;  %p60_p5 = scmp.eq.s32.totalorder %s413_s17, 0 }
   0xd   : > { %s963_s19 = smov (%p35_p0, %s33_s19), 0  ;;  %p768_p4 = por %p668_p1, %p54_p2 }
   0xe   : > { %p772_p6 = por %p60_p5, %p59_p3  ;;  %s101_s22 = ssub.s32 %s695_s15, %s963_s19 }
   0xf   : > { %p102_p7 = scmp.eq.s32.totalorder %s101_s22, 0  ;;  %s104_s23 = sadd.s32 1, %s679_s11 }
  0x10   : > { %s946_s21 = scalar_select %p772_p6, 1, 0 }
  0x11   : > { %s780_s24 = scalar_select %p102_p7, %s679_s11, %s104_s23  }
  0x12   : > { %p114_p8 = scmp.ne.s32.totalorder %s679_s11, %s675_s10  ;;  %p115_p9 = scmp.eq.s32.totalorder %s413_s17, 1 }
  0x13   : > { %p120_p10 = scmp.ne.s32.totalorder %s675_s10, %s671_s9  ;;  %p121_p11 = scmp.eq.s32.totalorder %s414_s18, 1 }
  0x14   : > { %p786_p12 = por %p115_p9, %p114_p8  ;;  %p455_p1 = scmp.lt.s32.totalorder %s699_s16, 2 }
  0x15   : > { %p791_p0 = por %p121_p11, %p120_p10  ;;  %s701_s27 = smov [#allocation2]  }
  0x16   : > { %s947_s25 = scalar_select %p786_p12, 1, 0 }
  0x17   : > { %s948_s26 = scalar_select %p791_p0, 1, 0 }
  0x18   : > { %s155_s28 = sshll.u32 %s701_s27, 4  ;;  %p798_p2 = pnand %p455_p1, %p768_p4  ;;  %s156_s28 = int_to_ptr.vmem [resolvable:$true] %s155_s28 }
  0x19   : > { %s532_s4 = scalar_lea.hbm %s940_s0, 256 }
  0x1a   : > { %p533_p3 = scmp.ne.s32.totalorder %s940_s0, %s532_s4  ;;  %p534_p5 = pneg %p798_p2 }
  0x1b   : > { %p539_p8 = scmp.lt.u32.totalorder %s532_s4, %s532_s4  ;;  %p541_p9 = scmp.lt.u32.totalorder %s532_s4, %s940_s0 }
  0x1c   : > { %p535_p7 = pnand %p534_p5, %p533_p3 }
  0x1d   : > { %p542_p10 = por %p541_p9, %p539_p8 }
  0x1e   : > { %p536_p4 = pneg %p535_p7 }
  0x20   : > { %p543_p11 = pnand %p542_p10, %p536_p4 }
  0x22   : > { %546 = shalt.err (!%p543_p11)
}
  0x23   : > { %s547_s12 = scalar_lea.vmem %s156_s28, 256  ;;  %s554_s17 = scalar_lea.vmem %s156_s28, 512 }
  0x24   : > { %p548_p1 = scmp.ne.s32.totalorder %s156_s28, %s547_s12  ;;  %p555_p12 = scmp.lt.s32.totalorder %s156_s28, %s156_s28 }
  0x25   : > { %p556_p6 = scmp.lt.s32.totalorder %s554_s17, %s547_s12 }
  0x26   : > { %p550_p13 = pnand %p548_p1, %p534_p5 }
  0x27   : > { %p557_p3 = por %p556_p6, %p555_p12 }
  0x28   : > { %p551_p0 = pneg %p550_p13 }
  0x2a   : > { %p558_p7 = pnand %p557_p3, %p551_p0 }
  0x2c   : > { %561 = shalt.err (!%p558_p7)
}
  0x2d   : > { %s702_s18 = smov 128   ;;  %s703_s20 = smov 8  }
  0x2e   : > { %447 = dma.hbm_to_vmem [thread:$0]  (!%p798_p2), %s940_s0, 256, %s156_s28, [#allocation3], %s702_s18, %s702_s18, %s703_s20  }
  0x2f   : > { %p423_p13 = scmp.ge.s32.totalorder %s699_s16, 1  ;;  %p187_p4 = scmp.lt.s32.totalorder %s699_s16, 3 }
  0x30   : > { %s704_s30 = smov [#allocation5]   ;;  %s562_s6 = scalar_lea.hbm %s941_s1, 256 }
  0x31   : > { %p829_p8 = pnand %p423_p13, %p187_p4  ;;  %s179_s3 = sshll.u32 %s704_s30, 4  ;;  %s180_s3 = int_to_ptr.vmem [resolvable:$true] %s179_s3 }
  0x32   : > { %p563_p6 = scmp.ne.s32.totalorder %s941_s1, %s562_s6  ;;  %p569_p9 = scmp.lt.u32.totalorder %s562_s6, %s562_s6 }
  0x33   : > { %s950_s27 = scalar_select %p829_p8, 1, 0 }
  0x34   : > { %p565_p12 = pnand %p563_p6, %p534_p5  ;;  %p571_p10 = scmp.lt.u32.totalorder %s562_s6, %s941_s1 }
  0x36   : > { %p566_p0 = pneg %p565_p12  ;;  %p572_p11 = por %p571_p10, %p569_p9 }
  0x38   : > { %p573_p1 = pnand %p572_p11, %p566_p0 }
  0x3a   : > { %576 = shalt.err (!%p573_p1)
}
  0x3b   : > { %s577_s17 = scalar_lea.vmem %s180_s3, 256  ;;  %s584_s22 = scalar_lea.vmem %s180_s3, 512 }
  0x3c   : > { %p578_p3 = scmp.ne.s32.totalorder %s180_s3, %s577_s17  ;;  %p585_p4 = scmp.lt.s32.totalorder %s180_s3, %s180_s3 }
  0x3d   : > { %p586_p8 = scmp.lt.s32.totalorder %s584_s22, %s577_s17 }
  0x3e   : > { %p580_p7 = pnand %p578_p3, %p534_p5 }
  0x3f   : > { %p587_p6 = por %p586_p8, %p585_p4 }
  0x40   : > { %p581_p13 = pneg %p580_p7 }
  0x42   : > { %p588_p12 = pnand %p587_p6, %p581_p13 }
  0x44   : > { %591 = shalt.err (!%p588_p12)
}
  0x45   : > { %450 = dma.hbm_to_vmem [thread:$0]  (!%p798_p2), %s941_s1, 256, %s180_s3, [#allocation6], %s702_s18, %s702_s18, %s703_s20  }
  0x46   : > { %p951_p0 = scmp.ne.s32.totalorder %s950_s27, 0 }
  0x47   : > { %s193_s4 = sand.u32 (!%p951_p0), 1, %s687_s13   ;;  %p952_p5 = scmp.ne.s32.totalorder (!%p951_p0), %s946_s21, 0 }
  0x48   : > { %191 = sbr.rel (%p951_p0) target bundleno = 140 (0x8c), region = 28  ;;  %s424_s5 = sshll.u32 (!%p951_p0), %s193_s4, 4 }
  0x49   : > { %s194_s6 = scalar_lea.sflag (!%p951_p0), [#allocation3], %s193_s4  ;;  %s197_s7 = scalar_lea.vmem (!%p951_p0), [#allocation2], %s424_s5 }
  0x4f   : > { %657 = dma.done.wait (%p952_p5), %s194_s6, 256  }
  0x50   : > { %659 = vsyncadd (%p952_p5), %s194_s6, 4294967040  ;;  %s203_s29 = scalar_lea.sflag [#allocation6], %s193_s4  ;;  %s206_s8 = scalar_lea.vmem [#allocation5], %s424_s5 }
  0x51   : > { %661 = dma.done.wait (%p952_p5), %s203_s29, 256  }
  0x52   : > { %663 = vsyncadd (%p952_p5), %s203_s29, 4294967040  ;;  %s229_s18 = sand.u32 1, %s675_s10   ;;  %s429_s20 = sshll.u32 %s691_s14, 4  ;;  %v705_v0 = vmov 0.0   ;;  %v245_v1 = vld [vmem:[%s197_s7] sm:$0xff]  ;;  %v246_v2 = vld [vmem:[%s197_s7 + $0x8] sm:$0xff] }
  0x53   : > { %s426_s27 = sshll.u32 %s229_s18, 3  ;;  %s873_s3 = sadd.s32 16, %s429_s20  ;;  %v247_v3 = vld [vmem:[%s206_s8] sm:$0xff]  ;;  %v248_v4 = vld [vmem:[%s206_s8 + $0x8] sm:$0xff] }
  0x54   : > { %s875_s28 = scalar_lea.vmem [#allocation7], %s426_s27  ;;  %v249_v5 = vsub.f32 %v245_v1, %v247_v3  ;;  %v250_v6 = vsub.f32 %v246_v2, %v248_v4  ;;  %p430_p2 = scmp.gt.s32.totalorder %s873_s3, 16 }
  0x55   : > { %244 = vst [vmem:[%s875_s28] sm:$0xff] %v705_v0 }
  0x56   : > { %v251_v7 = vand.u32 2147483647, %v249_v5  ;;  %v255_v8 = vmul.f32 0.5, %v249_v5  ;;  %v252_v9 = vand.u32 2147483647, %v250_v6  ;;  %v256_v10 = vmul.f32 0.5, %v250_v6 }
  0x57   : > { %271 = sbr.rel (%p430_p2) target bundleno = 99 (0x63), region = 44 }
  0x58   : > { %v257_v11 = vmul.f32 %v255_v8, %v249_v5  ;;  %v427_v12 = vadd.f32 -2.5, %v251_v7  ;;  %vm253_vm0 = vcmp.le.f32.partialorder %v251_v7, 5.0  ;;  %v258_v13 = vmul.f32 %v256_v10, %v250_v6 }
  0x59   : > { %v428_v14 = vadd.f32 -2.5, %v252_v9  ;;  %vm254_vm1 = vcmp.le.f32.partialorder %v252_v9, 5.0 }
  0x5a   : > { %v261_v15 = vmul.f32 5.0, %v427_v12 }
  0x5b   : > { %v262_v16 = vmul.f32 5.0, %v428_v14 }
  0x5c   : > { %v263_v17 = vsel %vm253_vm0, %v257_v11, %v261_v15  ;;  %v272_v19 = vld [vmem:[%s875_s28] sm:$0xff] (!%p430_p2) }
  0x5d   : > { %v264_v18 = vsel %vm254_vm1, %v258_v13, %v262_v16 }
  0x5e   : > { %v273_v20 = vadd.f32 %v264_v18, %v263_v17 }
  0x60   : > { %v274_v21 = vadd.f32 %v273_v20, %v272_v19 }
  0x62   : > { %275 = vst [vmem:[%s875_s28] sm:$0xff] %v274_v21 }
  0x63 PF: > { %p431_p8 = scmp.le.s32.totalorder %s873_s3, 16 }
  0x64   : > { %v280_v22 = vlaneseq (!%p431_p8)  ;;  %v283_v23 = vstv (!%p431_p8), %s429_s20 }
  0x65   : > { %279 = sbr.rel (%p431_p8) target bundleno = 115 (0x73), region = 48 }
  0x66   : > { %v281_v24 = vshrl.u32 (!%p431_p8), %v280_v22, 7 }
  0x68   : > { %v282_v25 = vadd.s32 (!%p431_p8), 8, %v281_v24  ;;  %v284_v26 = vadd.s32 (!%p431_p8), %v283_v23, %v281_v24 }
  0x69   : > { %v294_v30 = vld [vmem:[%s875_s28] sm:$0xff] (!%p431_p8) }
  0x6a   : > { %v285_v27 = vadd.s32 (!%p431_p8), %v283_v23, %v282_v25  ;;  %vm286_vm2 = vcmp.lt.s32.totalorder (!%p431_p8), %v284_v26, 16 }
  0x6b   : > { %v292_v28 = vsel (!%p431_p8), %vm286_vm2, %v263_v17, 0.0 }
  0x6c   : > { %vm287_vm3 = vcmp.lt.s32.totalorder %v285_v27, 16 }
  0x6d   : > { %v293_v29 = vsel %vm287_vm3, %v264_v18, 0.0 }
  0x6e   : > { %v295_v31 = vadd.f32 %v293_v29, %v292_v28 }
  0x70   : > { %v296_v32 = vadd.f32 %v295_v31, %v294_v30 }
  0x72   : > { %297 = vst [vmem:[%s875_s28] sm:$0xff] %v296_v32 }
  0x73 PF: > { %s433_s21 = sshll.u32 %s691_s14, 7  ;;  %s312_s23 = sshll.u32 %s875_s28, 4  ;;  %s313_s23 = int_to_ptr.vmem [resolvable:$true] %s312_s23 }
  0x74   : > { %s890_s22 = scalar_lea.hbm %s942_s2, %s433_s21  ;;  %s299_s30 = scalar_lea.sflag [#allocation4], %s229_s18 }
  0x75   : > { %s592_s4 = scalar_lea.vmem %s313_s23, 128  ;;  %p953_p10 = scmp.ne.s32.totalorder %s947_s25, 0 }
  0x76   : > { %p593_p9 = scmp.ne.s32.totalorder %s313_s23, %s592_s4  ;;  %s706_s5 = smov [#allocation7]  }
  0x77   : > { %s596_s6 = sshll.u32 %s706_s5, 4  ;;  %s597_s6 = int_to_ptr.vmem [resolvable:$false] %s596_s6 }
  0x78   : > { %p594_p11 = pnand %p593_p9, %p953_p10  ;;  %s598_s7 = scalar_lea.vmem %s597_s6, 256 }
  0x79   : > { %p599_p3 = scmp.lt.s32.totalorder %s313_s23, %s597_s6  ;;  %p600_p7 = scmp.lt.s32.totalorder %s598_s7, %s592_s4 }
  0x7a   : > { %p595_p1 = pneg %p594_p11 }
  0x7b   : > { %p601_p13 = por %p600_p7, %p599_p3 }
  0x7d   : > { %p602_p4 = pnand %p601_p13, %p595_p1 }
  0x7f   : > { %605 = shalt.err (!%p602_p4)
}
  0x80   : > { %s606_s14 = scalar_lea.hbm %s890_s22, 128  ;;  %s610_s18 = scalar_lea.hbm %s942_s2, 256 }
  0x81   : > { %p607_p6 = scmp.ne.s32.totalorder %s890_s22, %s606_s14  ;;  %p611_p5 = scmp.lt.u32.totalorder %s890_s22, %s942_s2 }
  0x82   : > { %p612_p2 = scmp.lt.u32.totalorder %s610_s18, %s606_s14  ;;  %p614_p9 = scmp.lt.u32.totalorder %s606_s14, %s890_s22 }
  0x83   : > { %p608_p12 = pnand %p607_p6, %p953_p10 }
  0x84   : > { %p613_p8 = por %p612_p2, %p611_p5 }
  0x85   : > { %p609_p0 = pneg %p608_p12 }
  0x86   : > { %p615_p11 = por %p614_p9, %p613_p8 }
  0x88   : > { %p616_p1 = pnand %p615_p11, %p609_p0 }
  0x8a   : > { %619 = shalt.err (!%p616_p1)
}
  0x8b   : > { %442 = dma.vmem_to_hbm [thread:$0]  (%p953_p10), %s313_s23, 128, %s890_s22, %s299_s30  }
  0x8c PF: > { %s324_s3 = sand.u32 1, %s671_s9   ;;  %p954_p3 = scmp.ne.s32.totalorder %s948_s26, 0 }
  0x8d   : > { %p955_p7 = scmp.ge.s32.totalorder %s699_s16, 2  ;;  %s325_s28 = scalar_lea.sflag [#allocation4], %s324_s3 }
  0x8f   : > { %p452_p13 = pnand %p955_p7, %p954_p3 }
  0x91   : > { %665 = dma.done.wait (!%p452_p13), %s325_s28, 128  }
  0x92   : > { %667 = vsyncadd (!%p452_p13), %s325_s28, 4294967168  ;;  %s21_s16 = sadd.s32 1, %s699_s16   ;;  %s956_s9 = smov %s675_s10 }
  0x93   : > { %p18_p4 = scmp.ge.s32.totalorder %s21_s16, 4   ;;  %s957_s10 = smov %s679_s11 }
  0x94   : > { %s958_s11 = smov %s780_s24  ;;  %s959_s12 = smov %s687_s13 }
  0x95   : > { %s930_s13 = smov 0   ;;  %s960_s14 = smov %s695_s15 }
  0x96   : > { %s961_s15 = smov %s963_s19  ;;  %20 = sbr.rel (!%p18_p4) target bundleno = 9 (0x9), region = 98 }
  0x9d   :  { %330 = vsyncpa [#allocation3], 1 }
  0x9e   :  { %332 = vsyncpa [#allocation3 + $0x1], 1 }
  0x9f   :  { %333 = vsyncpa [#allocation6], 1 }
  0xa0   :  { %335 = vsyncpa [#allocation6 + $0x1], 1 }
  0xa1   :  { %336 = vsyncpa [#allocation4], 1 }
  0xa2   :  { %338 = vsyncpa [#allocation4 + $0x1], 1 }

</bundles_post_ra>
